<compile_context>
chip_gen: v6e
topology: v6e:2x2x1
jax: 0.10.0
libtpu: 0.0.40
codegen_flags: <defaults>
</compile_context>

<pallas_src>
import functools

import jax
import jax.numpy as jnp
from jax.experimental import pallas as pl
from jax.experimental.pallas import tpu as pltpu


def _round_up(v, m):
    return (v + m - 1) // m * m


# --------------------------------------------------------------------------
# Pass 1: per-core partial segment sums over node tiles (accumulate into output).
# --------------------------------------------------------------------------
def _segment_sum_kernel(bidx_ref, x_ref, h_ref, cnt_ref, *,
                        tiles_per_core, tile_n, n_nodes, needs_mask):
    t = pl.program_id(1)

    @pl.when(t == 0)
    def _init():
        h_ref[...] = jnp.zeros_like(h_ref)
        cnt_ref[...] = jnp.zeros_like(cnt_ref)

    Bp = h_ref.shape[0]
    TN = x_ref.shape[0]

    bidx = bidx_ref[...]                                   # [1, TN] int32 (lane-major)
    x = x_ref[...]                                         # [TN, Hp] f32

    # one-hot built directly as [Bp, TN] -> no XLU transpose needed.
    graph_ids = jax.lax.broadcasted_iota(jnp.int32, (Bp, TN), 0)
    match = graph_ids == bidx                              # [Bp, TN]

    if needs_mask:
        # Ragged last tile and/or over-provisioned per-core tiles: mask by the
        # logical node index so garbage rows contribute nothing (and cannot NaN-poison).
        c = pl.program_id(0)
        node_start = (c * tiles_per_core + t) * tile_n
        lane_ids = jax.lax.broadcasted_iota(jnp.int32, (Bp, TN), 1)
        match = jnp.logical_and(match, node_start + lane_ids < n_nodes)
        row_ids = jax.lax.broadcasted_iota(jnp.int32, (TN, 1), 0)
        x = jnp.where(node_start + row_ids < n_nodes, x, 0.0)

    onehot = match.astype(jnp.float32)                     # [Bp, TN]
    h_ref[...] += jnp.dot(onehot, x, preferred_element_type=jnp.float32)
    cnt_ref[...] += jnp.sum(onehot, axis=1, keepdims=True)


# --------------------------------------------------------------------------
# Tiny MLP kernel on the pooled graph features (un-fused from the node loop).
# --------------------------------------------------------------------------
def _mlp_kernel(h_ref, cnt_ref, vn_in_ref, w1_ref, b1_ref, gamma_ref, beta_ref,
                w2_ref, b2_ref, vn_out_ref, *, pooling, num_graphs):
    h = jnp.sum(h_ref[...], axis=0)                        # [Bp, Hp] sum of core partials
    if pooling == "mean":
        cnt = jnp.sum(cnt_ref[...], axis=0)                # [Bp, 1]
        h = h / jnp.maximum(cnt, 1.0)
    h = h + vn_in_ref[...]

    # Linear -> BatchNorm1d (train-mode stats over real graphs) -> ReLU -> Linear
    z = jnp.dot(h, w1_ref[...], preferred_element_type=jnp.float32) + b1_ref[...]

    Bp, Hp = z.shape
    row_ids = jax.lax.broadcasted_iota(jnp.int32, (Bp, Hp), 0)
    valid = row_ids < num_graphs
    inv_b = jnp.float32(1.0 / num_graphs)
    zm = jnp.where(valid, z, 0.0)
    mean = jnp.sum(zm, axis=0, keepdims=True) * inv_b
    diff = jnp.where(valid, z - mean, 0.0)
    var = jnp.sum(diff * diff, axis=0, keepdims=True) * inv_b
    zn = (z - mean) * jax.lax.rsqrt(var + 1e-5)
    zn = zn * gamma_ref[...] + beta_ref[...]
    zn = jnp.maximum(zn, 0.0)                              # ReLU (Dropout p=0 is identity)

    vn = jnp.dot(zn, w2_ref[...], preferred_element_type=jnp.float32) + b2_ref[...]
    # Zero padded graph rows so any index in [B, Bp) gathers nothing in pass 2
    # (matches jax.nn.one_hot / scatter semantics).
    vn_out_ref[...] = jnp.where(valid, vn, 0.0).astype(vn_out_ref.dtype)


# --------------------------------------------------------------------------
# Pass 2: tiled gather/add  x_out = x + vn[batch_idx]   (always the MXU path).
# --------------------------------------------------------------------------
def _gather_add_kernel(bidx_ref, x_ref, vn_ref, x_out_ref):
    x = x_ref[...]                                         # [TN, Hp]
    bidx = bidx_ref[...]                                   # [TN, 1] int32
    TN = x.shape[0]
    Bp = vn_ref.shape[0]
    graph_ids = jax.lax.broadcasted_iota(jnp.int32, (TN, Bp), 1)
    onehot = (graph_ids == bidx).astype(jnp.float32)       # [TN, Bp]
    gathered = jnp.dot(onehot, vn_ref[...], preferred_element_type=jnp.float32)
    x_out_ref[...] = (x + gathered).astype(x_out_ref.dtype)


# --------------------------------------------------------------------------
# Wrapper.
# --------------------------------------------------------------------------
def virtual_node_layer(x, batch_idx, virtual_node, params, pooling="sum",
                       tile_rows=None, target_tile_bytes=4 * 1024 * 1024,
                       num_cores=2):
    """x: [N, H] float32, batch_idx: [N] int32 (values in [0, B)),
    virtual_node: [B, H] float32 (previous state; zeros for the first layer).
    params = (w1 [H,H], b1, gamma, beta, w2, b2).
    Returns (x_out [N, H], new_virtual_node [B, H])."""
    N, H = x.shape
    B = virtual_node.shape[0]
    w1, b1, gamma, beta, w2, b2 = params
    f32 = jnp.float32

    # Feature axis lane-padded only if needed; the node axis is never padded.
    Hp = H if H % 128 == 0 else _round_up(H, 128)
    Bp = _round_up(max(B, 8), 8)

    def pad2(a, rows, cols):
        a = a.astype(f32)
        return jnp.pad(a, ((0, rows - a.shape[0]), (0, cols - a.shape[1])))

    xw = x.astype(f32) if Hp == H else pad2(x, N, Hp)
    vnp_ = pad2(virtual_node, Bp, Hp)
    w1p = pad2(w1, Hp, Hp)
    w2p = pad2(w2, Hp, Hp)
    b1p = pad2(jnp.reshape(b1, (1, -1)), 1, Hp)
    b2p = pad2(jnp.reshape(b2, (1, -1)), 1, Hp)
    gp = pad2(jnp.reshape(gamma, (1, -1)), 1, Hp)
    bep = pad2(jnp.reshape(beta, (1, -1)), 1, Hp)

    bidx = batch_idx.astype(jnp.int32)
    bidx_lane = bidx.reshape(1, N)        # lane-major (pass 1, [Bp,TN] one-hot)
    bidx_sub = bidx.reshape(N, 1)         # sublane-major (pass 2)

    # --- byte-sized tile selection, clamped by a generation-aware VMEM budget ---
    try:
        vmem_phys = int(pltpu.get_tpu_info().vmem_capacity_bytes)
    except Exception:
        vmem_phys = 64 * 1024 * 1024      # conservative (v7x per-core figure)
    vmem_budget = min(int(vmem_phys * 0.45), 96 * 1024 * 1024)
    vmem_limit = max(vmem_budget, 32 * 1024 * 1024)

    row_bytes = Hp * 4
    if tile_rows is None:
        tn = _round_up(max(1, -(-target_tile_bytes // row_bytes)), 128)
    else:
        tn = _round_up(int(tile_rows), 128)
    # ~6 tile-sized buffers live at once (double-buffered in/out + temporaries).
    tn_cap = max(128, (vmem_budget // (6 * row_bytes)) // 128 * 128)
    tn = min(tn, tn_cap)
    if tn >= N:
        tn = N                            # single full-extent tile
        num_tiles = 1
    else:
        num_tiles = pl.cdiv(N, tn)

    num_cores = max(1, min(int(num_cores), num_tiles))
    tiles_per_core = pl.cdiv(num_tiles, num_cores)
    needs_mask = (num_cores * tiles_per_core * tn) != N
    last_blk = num_tiles - 1

    def x_map(c, t):
        return (jnp.minimum(c * tiles_per_core + t, last_blk), 0)

    def bidx_map(c, t):
        return (0, jnp.minimum(c * tiles_per_core + t, last_blk))

    # ---- pass 1: per-core partial segment sums ----
    h_part, cnt_part = pl.pallas_call(
        functools.partial(_segment_sum_kernel, tiles_per_core=tiles_per_core,
                          tile_n=tn, n_nodes=N, needs_mask=needs_mask),
        out_shape=(jax.ShapeDtypeStruct((num_cores, Bp, Hp), f32),
                   jax.ShapeDtypeStruct((num_cores, Bp, 1), f32)),
        grid=(num_cores, tiles_per_core),
        in_specs=[
            pl.BlockSpec((1, tn), bidx_map),               # batch_idx (lane-major)
            pl.BlockSpec((tn, Hp), x_map),                 # x tile
        ],
        out_specs=(
            pl.BlockSpec((None, Bp, Hp), lambda c, t: (c, 0, 0)),
            pl.BlockSpec((None, Bp, 1), lambda c, t: (c, 0, 0)),
        ),
        compiler_params=pltpu.CompilerParams(
            dimension_semantics=("parallel", "arbitrary"),
            vmem_limit_bytes=vmem_limit),
    )(bidx_lane, xw)

    # ---- MLP on pooled graph features (tiny, single step) ----
    vn_out = pl.pallas_call(
        functools.partial(_mlp_kernel, pooling=pooling, num_graphs=B),
        out_shape=jax.ShapeDtypeStruct((Bp, Hp), f32),
        grid=(1,),
        in_specs=[
            pl.BlockSpec((num_cores, Bp, Hp), lambda i: (0, 0, 0)),
            pl.BlockSpec((num_cores, Bp, 1), lambda i: (0, 0, 0)),
            pl.BlockSpec((Bp, Hp), lambda i: (0, 0)),      # previous vn
            pl.BlockSpec((Hp, Hp), lambda i: (0, 0)),      # w1
            pl.BlockSpec((1, Hp), lambda i: (0, 0)),       # b1
            pl.BlockSpec((1, Hp), lambda i: (0, 0)),       # gamma
            pl.BlockSpec((1, Hp), lambda i: (0, 0)),       # beta
            pl.BlockSpec((Hp, Hp), lambda i: (0, 0)),      # w2
            pl.BlockSpec((1, Hp), lambda i: (0, 0)),       # b2
        ],
        out_specs=pl.BlockSpec((Bp, Hp), lambda i: (0, 0)),
        compiler_params=pltpu.CompilerParams(
            dimension_semantics=("arbitrary",),
            vmem_limit_bytes=vmem_limit),
    )(h_part, cnt_part, vnp_, w1p, b1p, gp, bep, w2p, b2p)

    # ---- pass 2: gather back to nodes (independent tiles, parallel) ----
    x_out_p = pl.pallas_call(
        _gather_add_kernel,
        out_shape=jax.ShapeDtypeStruct((N, Hp), f32),
        grid=(num_tiles,),
        in_specs=[
            pl.BlockSpec((tn, 1), lambda t: (t, 0)),       # batch_idx (sublane-major)
            pl.BlockSpec((tn, Hp), lambda t: (t, 0)),      # x tile
            pl.BlockSpec((Bp, Hp), lambda t: (0, 0)),      # new vn (resident)
        ],
        out_specs=pl.BlockSpec((tn, Hp), lambda t: (t, 0)),
        compiler_params=pltpu.CompilerParams(
            dimension_semantics=("parallel",),
            vmem_limit_bytes=vmem_limit),
    )(bidx_sub, xw, vn_out)

    x_out = x_out_p if Hp == H else x_out_p[:, :H]
    x_out = x_out.astype(x.dtype)
    vn_new = vn_out[:B, :H].astype(x.dtype)
    return x_out, vn_new


# --------------------------------------------------------------------------
# Pure-JAX reference for validation.
# --------------------------------------------------------------------------
def _reference(x, batch_idx, virtual_node, params, pooling="sum"):
    w1, b1, gamma, beta, w2, b2 = params
    B = virtual_node.shape[0]
    hi = jax.lax.Precision.HIGHEST
    onehot = jax.nn.one_hot(batch_idx, B, dtype=jnp.float32)       # [N, B]
    h = jnp.dot(onehot.T, x, precision=hi)
    if pooling == "mean":
        h = h / jnp.maximum(onehot.sum(0)[:, None], 1.0)
    h = h + virtual_node
    z = jnp.dot(h, w1, precision=hi) + b1.reshape(1, -1)
    mean = z.mean(0, keepdims=True)
    var = ((z - mean) ** 2).mean(0, keepdims=True)
    z = (z - mean) / jnp.sqrt(var + 1e-5) * gamma.reshape(1, -1) + beta.reshape(1, -1)
    z = jnp.maximum(z, 0.0)
    vn = jnp.dot(z, w2, precision=hi) + b2.reshape(1, -1)
    return x + vn[batch_idx], vn


def _make_params(key, H):
    k1, k2, k3, k4 = jax.random.split(key, 4)
    s = 1.0 / (H ** 0.5)
    w1 = jax.random.uniform(k1, (H, H), jnp.float32, -s, s)
    b1 = jax.random.uniform(k2, (1, H), jnp.float32, -s, s)
    gamma = jnp.ones((1, H), jnp.float32)
    beta = jnp.zeros((1, H), jnp.float32)
    w2 = jax.random.uniform(k3, (H, H), jnp.float32, -s, s)
    b2 = jax.random.uniform(k4, (1, H), jnp.float32, -s, s)
    return (w1, b1, gamma, beta, w2, b2)


if __name__ == "__main__":
    key = jax.random.PRNGKey(0)

    # --- test 1: small shapes, sum pooling, single tile ---
    N, B, H = 64, 4, 32
    kx, kvn, kp, key = jax.random.split(key, 4)
    x = jax.random.normal(kx, (N, H), dtype=jnp.float32)
    batch_idx = jnp.repeat(jnp.arange(B, dtype=jnp.int32), N // B)
    virtual_node = 0.1 * jax.random.normal(kvn, (B, H), dtype=jnp.float32)
    params = _make_params(kp, H)

    x_out, vn_out = virtual_node_layer(x, batch_idx, virtual_node, params,
                                       pooling="sum")
    jax.block_until_ready((x_out, vn_out))
    x_ref, vn_ref = _reference(x, batch_idx, virtual_node, params, "sum")
    assert jnp.allclose(x_out, x_ref, atol=1e-3, rtol=1e-3), "test1 x mismatch"
    assert jnp.allclose(vn_out, vn_ref, atol=1e-3, rtol=1e-3), "test1 vn mismatch"

    # --- test 2: non-aligned shapes, mean pooling, ragged multi-tile + 2-core split ---
    N2, B2, H2 = 300, 5, 40
    kx2, kvn2, kp2, key = jax.random.split(key, 4)
    x2 = jax.random.normal(kx2, (N2, H2), dtype=jnp.float32)
    batch_idx2 = jnp.repeat(jnp.arange(B2, dtype=jnp.int32), N2 // B2)
    virtual_node2 = 0.1 * jax.random.normal(kvn2, (B2, H2), dtype=jnp.float32)
    params2 = _make_params(kp2, H2)

    x_out2, vn_out2 = virtual_node_layer(x2, batch_idx2, virtual_node2, params2,
                                         pooling="mean", tile_rows=128, num_cores=2)
    jax.block_until_ready((x_out2, vn_out2))
    x_ref2, vn_ref2 = _reference(x2, batch_idx2, virtual_node2, params2, "mean")
    assert jnp.allclose(x_out2, x_ref2, atol=1e-3, rtol=1e-3), "test2 x mismatch"
    assert jnp.allclose(vn_out2, vn_ref2, atol=1e-3, rtol=1e-3), "test2 vn mismatch"

    print("KERNEL_OK")
</pallas_src>

<mosaic_0001>
module attributes {stable_mosaic.version = 11 : i64} {
  func.func @_segment_sum_kernel(%arg0: i32, %arg1: i32, %arg2: memref<1x64xi32, #tpu.memory_space<vmem>>, %arg3: memref<64x128xf32, #tpu.memory_space<vmem>>, %arg4: memref<1x8x128xf32, #tpu.memory_space<vmem>>, %arg5: memref<1x8x1xf32, #tpu.memory_space<vmem>>) attributes {dimension_semantics = [#tpu.dimension_semantics<parallel>, #tpu.dimension_semantics<arbitrary>], iteration_bounds = array<i64: 1, 1>, scalar_prefetch = 0 : i64, scratch_operands = 0 : i64, tpu.core_type = #tpu.core_type<tc>, window_params = [{transform_indices = @transform_0, window_bounds = array<i64: 1, 64>}, {transform_indices = @transform_1, window_bounds = array<i64: 64, 128>}, {transform_indices = @transform_2, window_bounds = array<i64: 1, 8, 128>}, {transform_indices = @transform_3, window_bounds = array<i64: 1, 8, 1>}]} {
    %c0_i32 = arith.constant 0 : i32
    %0 = arith.cmpi eq, %arg1, %c0_i32 : i32
    %1 = arith.extui %0 : i1 to i32
    %c0_i32_0 = arith.constant 0 : i32
    %2 = arith.cmpi ne, %1, %c0_i32_0 : i32
    scf.if %2 {
      %cst_17 = arith.constant 0.000000e+00 : f32
      %25 = vector.broadcast %cst_17 : f32 to vector<8x128xf32>
      %c0_18 = arith.constant 0 : index
      %c0_19 = arith.constant 0 : index
      %c0_20 = arith.constant 0 : index
      %26 = vector.load %arg4[%c0_18, %c0_19, %c0_20] : memref<1x8x128xf32, #tpu.memory_space<vmem>>, vector<1x8x128xf32>
      %27 = vector.shape_cast %26 : vector<1x8x128xf32> to vector<8x128xf32>
      %28 = vector.shape_cast %25 : vector<8x128xf32> to vector<1x8x128xf32>
      tpu.vector_store %arg4[%c0_18, %c0_19, %c0_20], %28 {strides = array<i32>} : memref<1x8x128xf32, #tpu.memory_space<vmem>>, vector<1x8x128xf32>,
      %cst_21 = arith.constant 0.000000e+00 : f32
      %29 = vector.broadcast %cst_21 : f32 to vector<8x1xf32>
      %c0_22 = arith.constant 0 : index
      %c0_23 = arith.constant 0 : index
      %c0_24 = arith.constant 0 : index
      %30 = vector.load %arg5[%c0_22, %c0_23, %c0_24] : memref<1x8x1xf32, #tpu.memory_space<vmem>>, vector<1x8x1xf32>
      %31 = vector.shape_cast %30 : vector<1x8x1xf32> to vector<8x1xf32>
      %32 = vector.shape_cast %29 : vector<8x1xf32> to vector<1x8x1xf32>
      tpu.vector_store %arg5[%c0_22, %c0_23, %c0_24], %32 {strides = array<i32>} : memref<1x8x1xf32, #tpu.memory_space<vmem>>, vector<1x8x1xf32>,
    } else {
    }
    %c0 = arith.constant 0 : index
    %c0_1 = arith.constant 0 : index
    %3 = vector.load %arg2[%c0, %c0_1] : memref<1x64xi32, #tpu.memory_space<vmem>>, vector<1x64xi32>
    %c0_2 = arith.constant 0 : index
    %c0_3 = arith.constant 0 : index
    %4 = vector.load %arg3[%c0_2, %c0_3] : memref<64x128xf32, #tpu.memory_space<vmem>>, vector<64x128xf32>
    %5 = tpu.iota {dimensions = array<i32: 0>} : vector<8x64xi32>
    %6 = vector.broadcast %3 : vector<1x64xi32> to vector<8x64xi32>
    %7 = arith.cmpi eq, %5, %6 : vector<8x64xi32>
    %8 = arith.extui %7 : vector<8x64xi1> to vector<8x64xi32>
    %9 = arith.sitofp %8 : vector<8x64xi32> to vector<8x64xf32>
    %c0_4 = arith.constant 0 : index
    %c0_5 = arith.constant 0 : index
    %c0_6 = arith.constant 0 : index
    %10 = vector.load %arg4[%c0_4, %c0_5, %c0_6] : memref<1x8x128xf32, #tpu.memory_space<vmem>>, vector<1x8x128xf32>
    %11 = vector.shape_cast %10 : vector<1x8x128xf32> to vector<8x128xf32>
    %cst = arith.constant dense<0.000000e+00> : vector<8x128xf32>
    %12 = tpu.matmul %9, %4, %cst {dimension_numbers = #tpu.dot_dimension_numbers<[1], [0], [0], [1], [0, 0, 1, 1], [], []>} : vector<8x64xf32>, vector<64x128xf32>, vector<8x128xf32> -> vector<8x128xf32>
    %13 = arith.addf %11, %12 : vector<8x128xf32>
    %c0_7 = arith.constant 0 : index
    %c0_8 = arith.constant 0 : index
    %c0_9 = arith.constant 0 : index
    %14 = vector.load %arg4[%c0_7, %c0_8, %c0_9] : memref<1x8x128xf32, #tpu.memory_space<vmem>>, vector<1x8x128xf32>
    %15 = vector.shape_cast %14 : vector<1x8x128xf32> to vector<8x128xf32>
    %16 = vector.shape_cast %13 : vector<8x128xf32> to vector<1x8x128xf32>
    tpu.vector_store %arg4[%c0_7, %c0_8, %c0_9], %16 {strides = array<i32>} : memref<1x8x128xf32, #tpu.memory_space<vmem>>, vector<1x8x128xf32>,
    %c0_10 = arith.constant 0 : index
    %c0_11 = arith.constant 0 : index
    %c0_12 = arith.constant 0 : index
    %17 = vector.load %arg5[%c0_10, %c0_11, %c0_12] : memref<1x8x1xf32, #tpu.memory_space<vmem>>, vector<1x8x1xf32>
    %18 = vector.shape_cast %17 : vector<1x8x1xf32> to vector<8x1xf32>
    %cst_13 = arith.constant dense<0.000000e+00> : vector<8xf32>
    %19 = vector.multi_reduction <add>, %9, %cst_13 [1] : vector<8x64xf32> to vector<8xf32>
    %20 = vector.shape_cast %19 : vector<8xf32> to vector<8x1xf32>
    %21 = arith.addf %18, %20 : vector<8x1xf32>
    %c0_14 = arith.constant 0 : index
    %c0_15 = arith.constant 0 : index
    %c0_16 = arith.constant 0 : index
    %22 = vector.load %arg5[%c0_14, %c0_15, %c0_16] : memref<1x8x1xf32, #tpu.memory_space<vmem>>, vector<1x8x1xf32>
    %23 = vector.shape_cast %22 : vector<1x8x1xf32> to vector<8x1xf32>
    %24 = vector.shape_cast %21 : vector<8x1xf32> to vector<1x8x1xf32>
    tpu.vector_store %arg5[%c0_14, %c0_15, %c0_16], %24 {strides = array<i32>} : memref<1x8x1xf32, #tpu.memory_space<vmem>>, vector<1x8x1xf32>,
    return
  }
  func.func @transform_0(%arg0: i32, %arg1: i32) -> (i32, i32) {
    %c1_i32 = arith.constant 1 : i32
    %0 = arith.muli %arg0, %c1_i32 : i32
    %1 = arith.addi %0, %arg1 : i32
    %c0_i32 = arith.constant 0 : i32
    %2 = arith.minsi %1, %c0_i32 : i32
    %c0_i32_0 = arith.constant 0 : i32
    %c0_i32_1 = arith.constant 0 : i32
    return %c0_i32_0, %2 : i32, i32
  }
  func.func @transform_1(%arg0: i32, %arg1: i32) -> (i32, i32) {
    %c1_i32 = arith.constant 1 : i32
    %0 = arith.muli %arg0, %c1_i32 : i32
    %1 = arith.addi %0, %arg1 : i32
    %c0_i32 = arith.constant 0 : i32
    %2 = arith.minsi %1, %c0_i32 : i32
    %c0_i32_0 = arith.constant 0 : i32
    %c0_i32_1 = arith.constant 0 : i32
    return %2, %c0_i32_0 : i32, i32
  }
  func.func @transform_2(%arg0: i32, %arg1: i32) -> (i32, i32, i32) {
    %c0_i32 = arith.constant 0 : i32
    %c0_i32_0 = arith.constant 0 : i32
    %c0_i32_1 = arith.constant 0 : i32
    return %arg0, %c0_i32, %c0_i32_0 : i32, i32, i32
  }
  func.func @transform_3(%arg0: i32, %arg1: i32) -> (i32, i32, i32) {
    %c0_i32 = arith.constant 0 : i32
    %c0_i32_0 = arith.constant 0 : i32
    %c0_i32_1 = arith.constant 0 : i32
    return %arg0, %c0_i32, %c0_i32_0 : i32, i32, i32
  }
}

</mosaic_0001>

<bundles_post_ra>
// kernel: tpu_custom_call.1
= control target key start
LH: loop header
LB: loop body
LE: loop exit
PB: predicated region body
PF: predicated region fallthrough
CT: control target
= control target key end

     0   :  { %9 = vsyncpa [#allocation3], 0  ;;  %s342_s0 = inlined_call_operand.hbm [shape: s32[1,64], index: 0, kind: input, shape index: {}]   ;;  %s343_s1 = inlined_call_operand.hbm [shape: f32[64,128], index: 1, kind: input, shape index: {}]   ;;  %s344_s2 = inlined_call_operand.hbm [shape: f32[1,8,128], index: 2, kind: output, shape index: {0}]   ;;  %s345_s3 = inlined_call_operand.vmem [shape: f32[1,8,1], index: 3, kind: output, shape index: {1}]  }
   0x1   :  { %10 = vsyncpa [#allocation6], 0 }
   0x2   :  { %11 = vsyncpa [#allocation4], 0  ;;  %s295_s12 = smov [#allocation2]   ;;  %s296_s14 = smov [#allocation5]  }
   0x3   :  { %s23_s13 = sshll.u32 %s295_s12, 4  ;;  %s38_s15 = sshll.u32 %s296_s14, 4  ;;  %s24_s13 = int_to_ptr.vmem [resolvable:$true] %s23_s13  ;;  %s39_s15 = int_to_ptr.vmem [resolvable:$true] %s38_s15 }
   0x4   :  { %s237_s16 = scalar_lea.vmem %s24_s13, 16  ;;  %s241_s17 = scalar_lea.vmem %s24_s13, 32 }
   0x5   :  { %p238_p0 = scmp.ne.s32.totalorder %s24_s13, %s237_s16  ;;  %p242_p1 = scmp.lt.s32.totalorder %s24_s13, %s24_s13 }
   0x6   :  { %p243_p2 = scmp.lt.s32.totalorder %s241_s17, %s237_s16 }
   0x8   :  { %p244_p3 = por %p243_p2, %p242_p1 }
   0xa   :  { %p245_p4 = pnand %p244_p3, %p238_p0 }
   0xc   :  { %248 = shalt.err (!%p245_p4)
}
   0xd   :  { %26 = dma.hbm_to_vmem [thread:$0]  %s342_s0, 16, %s24_s13, [#allocation3]  }
   0xe   :  { %s257_s20 = scalar_lea.vmem %s39_s15, 1024  ;;  %p262_p6 = scmp.lt.s32.totalorder %s39_s15, %s39_s15 }
   0xf   :  { %p258_p5 = scmp.ne.s32.totalorder %s39_s15, %s257_s20  ;;  %p263_p7 = scmp.lt.s32.totalorder %s257_s20, %s257_s20 }
  0x11   :  { %p264_p8 = por %p263_p7, %p262_p6 }
  0x13   :  { %p265_p9 = pnand %p264_p8, %p258_p5 }
  0x15   :  { %268 = shalt.err (!%p265_p9)
}
  0x16   :  { %s297_s21 = smov 128   ;;  %s298_s22 = smov 8  }
  0x17   :  { %44 = dma.hbm_to_vmem [thread:$0]  %s343_s1, 1024, %s39_s15, [#allocation6], %s297_s21, %s297_s21, %s298_s22  }
  0x18   :  { %289 = dma.done.wait [#allocation3], 16  }
  0x19   :  { %290 = vsyncadd [#allocation3], 4294967280 }
  0x1a   :  { %291 = dma.done.wait [#allocation6], 1024  }
  0x1b   :  { %292 = vsyncadd [#allocation6], 4294966272  ;;  %v299_v0 = vmov 0.0   ;;  %vm300_vm0 = vmmov 0   ;;  %v74_v1 = vlaneseq  ;;  %v73_v3 = vld [vmem:[#allocation5 + $0x38] sm:$0xff]  ;;  %v72_v4 = vld [vmem:[#allocation5 + $0x30] sm:$0xff] }
  0x1c   :  { %203 = vmatprep.subr.mxu0 %v299_v0  ;;  %219 = vmatprep.mubr.msk.f32.mxu0 %vm300_vm0, %v299_v0  ;;  %v71_v5 = vld [vmem:[#allocation5 + $0x28] sm:$0xff]  ;;  %v191_v6 = vld [vmem:[#allocation2] ss:$0 sm:$0xff]  ;;  %v70_v7 = vld [vmem:[#allocation5 + $0x20] sm:$0xff]  ;;  %vm84_vm2 = vcmask 523264   ;;  %vm63_vm3 = vcmask 7168  }
  0x1d   :  { %v75_v2 = vshrl.u32 %v74_v1, 7  ;;  %204 = vmatpush3.msra.mxu0 %v73_v3  ;;  %v69_v10 = vld [vmem:[#allocation5 + $0x18] sm:$0xff]  ;;  %v68_v11 = vld [vmem:[#allocation5 + $0x10] sm:$0xff]  ;;  %v67_v12 = vld [vmem:[#allocation5 + $0x8] sm:$0xff]  ;;  %64 = vst.msk [vmem:[%s345_s3] sm:$0xff] %vm63_vm3, %v299_v0  ;;  %s301_s29 = smov [#allocation7]  }
  0x1e   :  { %205 = vmatprep.subr.mxu0 %v299_v0  ;;  %v66_v13 = vld [vmem:[#allocation5] sm:$0xff]  ;;  %s173_s30 = sshll.u32 %s301_s29, 4  ;;  %s174_s30 = int_to_ptr.vmem [resolvable:$true] %s173_s30 }
  0x1f   :  { %206 = vmatpush3.msra.mxu0 %v72_v4  ;;  %vm80_vm1 = vcmp.eq.s32.totalorder %v75_v2, %v191_v6  ;;  %s269_s4 = scalar_lea.vmem %s174_s30, 128  ;;  %p274_p11 = scmp.lt.s32.totalorder %s174_s30, %s174_s30 }
  0x20   :  { %207 = vmatprep.subr.mxu0 %v299_v0  ;;  %v192_v8 = vsel %vm80_vm1, 1.0, %v299_v0  ;;  %p270_p10 = scmp.ne.s32.totalorder %s174_s30, %s269_s4  ;;  %p275_p12 = scmp.lt.s32.totalorder %s269_s4, %s269_s4 }
  0x21   :  { %208 = vmatpush3.msra.mxu0 %v71_v5  ;;  %v161_v9 = vsel %vm84_vm2, %v192_v8, 0.0 }
  0x22   :  { %209 = vmatprep.subr.mxu0 %v299_v0  ;;  %162 = vadd.xlane.f32.xlu0 %v161_v9  ;;  %p276_p13 = por %p275_p12, %p274_p11 }
  0x23   :  { %210 = vmatpush3.msra.mxu0 %v70_v7 }
  0x24   :  { %211 = vmatprep.subr.mxu0 %v299_v0  ;;  %v160_v14 = vld [vmem:[%s345_s3] sm:$0xff]  ;;  %p277_p0 = pnand %p276_p13, %p270_p10 }
  0x25   :  { %212 = vmatpush3.msra.mxu0 %v69_v10 }
  0x26   :  { %213 = vmatprep.subr.mxu0 %v299_v0 }
  0x27   :  { %214 = vmatpush3.msra.mxu0 %v68_v11 }
  0x28   :  { %215 = vmatprep.subr.mxu0 %v299_v0 }
  0x29   :  { %216 = vmatpush3.msra.mxu0 %v67_v12 }
  0x2a   :  { %217 = vmatprep.subr.mxu0 %v299_v0 }
  0x2b   :  { %218 = vmatpush3.msra.mxu0 %v66_v13 }
  0x2c   :  { %220 = vmatmul.mubr.msk.f32.vlgmr.msra.gmra.mxu0 %vm84_vm2, %v192_v8 }
  0xab   :  { %v163_v15 = vpop.xlane.xlu0 %162 }
  0xac   :  { %v164_v16 = vadd.f32 %v163_v15, %v160_v14 }
  0xae   :  { %166 = vst.msk [vmem:[%s345_s3] sm:$0xff] %vm63_vm3, %v164_v16 }
  0xec   :  { %v154_v17 = vpop.f32.mrf.mxu0 }
  0xed   :  { %159 = vst [vmem:[#allocation7] sm:$0xff] %v154_v17 }
  0xee   :  { %v221_v18 = vpop.f32.mrf.mxu0 }
  0xef   :  { %280 = shalt.err (!%p277_p0)
}
  0xf0   :  { %176 = dma.vmem_to_hbm [thread:$0]  %s174_s30, 128, %s344_s2, [#allocation4]  }
  0xf1   :  { %293 = dma.done.wait [#allocation4], 128  }
  0xf2   :  { %294 = vsyncadd [#allocation4], 4294967168 }
  0xf3   :  { %184 = vsyncpa [#allocation3], 1 }
  0xf4   :  { %185 = vsyncpa [#allocation6], 1 }
  0xf5   :  { %186 = vsyncpa [#allocation4], 1 }

</bundles_post_ra>
